<compile_context>
chip_gen: v5e
topology: v5e:2x2
jax: 0.10.0
libtpu: 0.0.40
codegen_flags: <defaults>
</compile_context>

<pallas_src>
import jax
import jax.numpy as jnp
from jax import lax
from jax.experimental import pallas as pl
from jax.experimental.pallas import tpu as pltpu


def _round_up(x, m):
    return ((x + m - 1) // m) * m


def _make_embed_kernel(s_pad, ts):
    """Kernel closure over static tile geometry."""

    def kernel(ids_ref, pos_ref, word_ref, out_ref, gathered, sems):
        # ids_ref : SMEM (B*S_pad,) int32       (scalar prefetch)
        # pos_ref : VMEM (Ts, D)                (position rows for this seq tile,
        #                                        reused across the inner batch axis)
        # word_ref: HBM  (V, D)                 (full word table, memory_space=pl.ANY)
        # out_ref : VMEM (Ts, D)                (batch dim squeezed)
        # gathered: VMEM (2, Ts, D) scratch     (double buffer)
        # sems    : DMA semaphores (2,)         (one shared sem per slot)
        st = pl.program_id(0)          # sequence-tile index (outer, "parallel")
        b = pl.program_id(1)           # batch index         (inner, "arbitrary")
        nb = pl.num_programs(1)
        slot = b & 1

        def issue_gathers(batch_idx, dst_slot):
            # Issue Ts row-gather DMAs, all signalling the same per-slot sem.
            base = batch_idx * s_pad + st * ts

            def body(t, carry):
                row = ids_ref[base + t]
                pltpu.make_async_copy(
                    word_ref.at[pl.ds(row, 1)],            # (1, D) row in HBM
                    gathered.at[dst_slot, pl.ds(t, 1)],    # (1, D) row in VMEM
                    sems.at[dst_slot],
                ).start()
                return carry

            lax.fori_loop(0, ts, body, 0, unroll=8)

        # Prime the pipeline at the start of each sequence-tile row.
        @pl.when(b == 0)
        def _prime():
            issue_gathers(b, slot)

        # Prefetch the NEXT batch's tile for this same seq tile before waiting,
        # so its HBM latency hides behind this step's wait + add + store.
        # (All SMEM id reads happen before any .wait().)
        @pl.when(b + 1 < nb)
        def _prefetch_next():
            issue_gathers(b + 1, 1 - slot)

        # One aggregated wait: Ts row copies of (1, D) signalled exactly
        # Ts*D*itemsize bytes on sems[slot]; the wait only needs the semaphore
        # and a byte count, so we pass the (Ts, D) destination view for both
        # endpoints of the descriptor.
        pltpu.make_async_copy(
            gathered.at[slot], gathered.at[slot], sems.at[slot],
        ).wait()

        out_ref[...] = gathered[slot] + pos_ref[...]

    return kernel


def embeddings_forward(input_ids, word_emb, pos_emb, *, max_tile_tokens=512):
    """input_ids: (B, S) int; word_emb: (V, D); pos_emb: (Smax, D).

    Returns (B, S, D) = word_emb[input_ids] + pos_emb[:S]  (dropout is identity
    at inference). D should be a multiple of 128 for lane-dense stores (it is
    the full last dim either way, so other values still run, just masked).
    """
    B, S = input_ids.shape
    V, D = word_emb.shape
    assert pos_emb.shape[1] == D
    assert S <= pos_emb.shape[0], "sequence longer than max_seq_len"
    assert word_emb.dtype == pos_emb.dtype
    dtype = word_emb.dtype
    itemsize = jnp.dtype(dtype).itemsize

    # Pad S up to a multiple of 8 (sublane); pick Ts as the largest multiple of
    # 8 <= max_tile_tokens that divides s_pad (no partial tiles) and keeps the
    # per-step VMEM footprint (~6 * Ts * D * itemsize) under ~24 MiB so it is
    # safe on v7x's 64 MiB VMEM as well as v5e/v6e.
    s_pad = _round_up(S, 8)
    vmem_budget = 24 * 1024 * 1024
    ts_cap = max(8, (vmem_budget // (6 * D * itemsize)) // 8 * 8)
    ts_max = max(8, (min(max_tile_tokens, ts_cap, s_pad) // 8) * 8)
    ts = 8
    for cand in range(ts_max, 7, -8):
        if s_pad % cand == 0:
            ts = cand
            break
    num_st = s_pad // ts

    # Clamp ids so the row-gather DMA can never address outside the word table
    # (note: silently maps out-of-range ids to valid rows), and pad the
    # sequence dim to s_pad (padding uses token id 0).
    ids = jnp.clip(input_ids.astype(jnp.int32), 0, V - 1)
    if s_pad > S:
        ids = jnp.pad(ids, ((0, 0), (0, s_pad - S)))
    ids_flat = ids.reshape(B * s_pad)

    # Position rows actually used, padded so the (ts, D) tiling is exact.
    pos_used = pos_emb[:S]
    if s_pad > S:
        pos_used = jnp.pad(pos_used, ((0, s_pad - S), (0, 0)))

    grid_spec = pltpu.PrefetchScalarGridSpec(
        num_scalar_prefetch=1,                     # ids_flat -> SMEM
        grid=(num_st, B),                          # seq tiles outer, batch inner
        in_specs=[
            # Pos tile: constant block index across the inner batch axis
            # -> Pallas skips re-fetching it for every batch element.
            pl.BlockSpec((ts, D), lambda st, b, ids: (st, 0)),
            # Word table: stays in HBM; gathered manually inside the kernel.
            pl.BlockSpec(memory_space=pl.ANY),
        ],
        # Lane/sublane-dense output block; batch dim squeezed.
        out_specs=pl.BlockSpec((None, ts, D), lambda st, b, ids: (b, st, 0)),
        scratch_shapes=[
            pltpu.VMEM((2, ts, D), dtype),         # double-buffered gathered rows
            pltpu.SemaphoreType.DMA((2,)),         # one shared DMA sem per slot
        ],
    )

    out = pl.pallas_call(
        _make_embed_kernel(s_pad, ts),
        grid_spec=grid_spec,
        out_shape=jax.ShapeDtypeStruct((B, s_pad, D), dtype),
        compiler_params=pltpu.CompilerParams(
            # Seq-tile axis may be split across v7x's 2 TensorCores; the batch
            # axis must stay sequential (the double-buffer prefetch walks it).
            dimension_semantics=("parallel", "arbitrary"),
            vmem_limit_bytes=32 * 1024 * 1024,
        ),
    )(ids_flat, pos_used, word_emb)

    # Only triggers when S is not a multiple of 8 (never for typical LRA
    # lengths); otherwise s_pad == S and no extra output copy is made.
    if s_pad > S:
        out = out[:, :S, :]
    return out


if __name__ == "__main__":
    # Small config consistent with the module's __init__ (embedding_dim == dim).
    config = dict(vocab_size=64, max_seq_len=16, embedding_dim=128, dim=128,
                  dropout_prob=0.1)
    B, S = 2, 8
    D = config["embedding_dim"]

    key = jax.random.PRNGKey(0)
    k_ids, k_word, k_pos = jax.random.split(key, 3)

    # Deterministic parameter init: normal(std=0.02), like the PyTorch module.
    word_emb = (0.02 * jax.random.normal(
        k_word, (config["vocab_size"], D))).astype(jnp.float32)
    pos_emb = (0.02 * jax.random.normal(
        k_pos, (config["max_seq_len"], D))).astype(jnp.float32)
    input_ids = jax.random.randint(k_ids, (B, S), 0, config["vocab_size"],
                                   dtype=jnp.int32)

    out = jax.block_until_ready(embeddings_forward(input_ids, word_emb, pos_emb))
    ref = word_emb[input_ids] + pos_emb[:S][None, :, :]
    assert out.shape == (B, S, D)
    assert jnp.allclose(out, ref, atol=1e-6), "mismatch vs reference (small)"

    # Second check at a larger shape: exercises the multi-tile grid, the
    # double-buffered gather (prime + cross-step prefetch) and pos-tile reuse.
    B2, S2, V2 = 2, 1024, 1000
    k2a, k2b, k2c = jax.random.split(jax.random.PRNGKey(1), 3)
    word2 = (0.02 * jax.random.normal(k2a, (V2, D))).astype(jnp.float32)
    pos2 = (0.02 * jax.random.normal(k2b, (S2, D))).astype(jnp.float32)
    ids2 = jax.random.randint(k2c, (B2, S2), 0, V2, dtype=jnp.int32)

    out2 = jax.block_until_ready(embeddings_forward(ids2, word2, pos2))
    ref2 = word2[ids2] + pos2[:S2][None, :, :]
    assert out2.shape == (B2, S2, D)
    assert jnp.allclose(out2, ref2, atol=1e-6), "mismatch vs reference (large)"

    print("KERNEL_OK")
</pallas_src>

<mosaic_0001>
module attributes {stable_mosaic.version = 11 : i64} {
  func.func @kernel(%arg0: i32, %arg1: i32, %arg2: memref<16xi32, #tpu.memory_space<smem>>, %arg3: memref<8x128xf32, #tpu.memory_space<vmem>>, %arg4: memref<64x128xf32, #tpu.memory_space<any>>, %arg5: memref<1x8x128xf32, #tpu.memory_space<vmem>>, %arg6: memref<2x8x128xf32, #tpu.memory_space<vmem>>, %arg7: memref<2x!tpu.dma_semaphore, #tpu.memory_space<semaphore_mem>>) attributes {dimension_semantics = [#tpu.dimension_semantics<parallel>, #tpu.dimension_semantics<arbitrary>], iteration_bounds = array<i64: 1, 2>, scalar_prefetch = 1 : i64, scratch_operands = 2 : i64, tpu.core_type = #tpu.core_type<tc>, window_params = [{transform_indices = @transform_0, window_bounds = array<i64: 8, 128>}, {}, {transform_indices = @transform_2, window_bounds = array<i64: 1, 8, 128>}]} {
    %c1_i32 = arith.constant 1 : i32
    %0 = arith.andi %arg1, %c1_i32 : i32
    %c0_i32 = arith.constant 0 : i32
    %1 = arith.cmpi eq, %arg1, %c0_i32 : i32
    %2 = arith.extui %1 : i1 to i32
    %c0_i32_0 = arith.constant 0 : i32
    %3 = arith.cmpi ne, %2, %c0_i32_0 : i32
    scf.if %3 {
      %c8_i32 = arith.constant 8 : i32
      %22 = arith.muli %arg1, %c8_i32 : i32
      %c8_i32_13 = arith.constant 8 : i32
      %23 = arith.muli %arg0, %c8_i32_13 : i32
      %24 = arith.addi %22, %23 : i32
      %c0_i32_14 = arith.constant 0 : i32
      %25 = arith.addi %24, %c0_i32_14 : i32
      %26 = arith.index_cast %25 : i32 to index
      %27 = memref.load %arg2[%26] : memref<16xi32, #tpu.memory_space<smem>>
      %c0_i32_15 = arith.constant 0 : i32
      %28 = tpu.memref_slice %arg4[%27, %c0_i32_15] : memref<64x128xf32, #tpu.memory_space<any>> -> memref<1x128xf32, #tpu.memory_space<any>>
      %c0_i32_16 = arith.constant 0 : i32
      %29 = tpu.memref_slice %arg6[%0, %c0_i32_14, %c0_i32_16] : memref<2x8x128xf32, #tpu.memory_space<vmem>> -> memref<1x1x128xf32, #tpu.memory_space<vmem>>
      %30 = tpu.memref_squeeze %29 : memref<1x1x128xf32, #tpu.memory_space<vmem>> -> memref<1x128xf32, #tpu.memory_space<vmem>>
      %31 = tpu.memref_slice %arg7[%0] : memref<2x!tpu.dma_semaphore, #tpu.memory_space<semaphore_mem>> -> memref<1x!tpu.dma_semaphore, #tpu.memory_space<semaphore_mem>>
      %32 = tpu.memref_squeeze %31 : memref<1x!tpu.dma_semaphore, #tpu.memory_space<semaphore_mem>> -> memref<!tpu.dma_semaphore, #tpu.memory_space<semaphore_mem>>
      tpu.enqueue_dma source(%28 : memref<1x128xf32, #tpu.memory_space<any>>) target(%30 : memref<1x128xf32, #tpu.memory_space<vmem>>) target_semaphore(%32 : memref<!tpu.dma_semaphore, #tpu.memory_space<semaphore_mem>>)
      %c1_i32_17 = arith.constant 1 : i32
      %33 = arith.addi %24, %c1_i32_17 : i32
      %34 = arith.index_cast %33 : i32 to index
      %35 = memref.load %arg2[%34] : memref<16xi32, #tpu.memory_space<smem>>
      %c0_i32_18 = arith.constant 0 : i32
      %36 = tpu.memref_slice %arg4[%35, %c0_i32_18] : memref<64x128xf32, #tpu.memory_space<any>> -> memref<1x128xf32, #tpu.memory_space<any>>
      %c0_i32_19 = arith.constant 0 : i32
      %37 = tpu.memref_slice %arg6[%0, %c1_i32_17, %c0_i32_19] : memref<2x8x128xf32, #tpu.memory_space<vmem>> -> memref<1x1x128xf32, #tpu.memory_space<vmem>>
      %38 = tpu.memref_squeeze %37 : memref<1x1x128xf32, #tpu.memory_space<vmem>> -> memref<1x128xf32, #tpu.memory_space<vmem>>
      %39 = tpu.memref_slice %arg7[%0] : memref<2x!tpu.dma_semaphore, #tpu.memory_space<semaphore_mem>> -> memref<1x!tpu.dma_semaphore, #tpu.memory_space<semaphore_mem>>
      %40 = tpu.memref_squeeze %39 : memref<1x!tpu.dma_semaphore, #tpu.memory_space<semaphore_mem>> -> memref<!tpu.dma_semaphore, #tpu.memory_space<semaphore_mem>>
      tpu.enqueue_dma source(%36 : memref<1x128xf32, #tpu.memory_space<any>>) target(%38 : memref<1x128xf32, #tpu.memory_space<vmem>>) target_semaphore(%40 : memref<!tpu.dma_semaphore, #tpu.memory_space<semaphore_mem>>)
      %c2_i32_20 = arith.constant 2 : i32
      %41 = arith.addi %24, %c2_i32_20 : i32
      %42 = arith.index_cast %41 : i32 to index
      %43 = memref.load %arg2[%42] : memref<16xi32, #tpu.memory_space<smem>>
      %c0_i32_21 = arith.constant 0 : i32
      %44 = tpu.memref_slice %arg4[%43, %c0_i32_21] : memref<64x128xf32, #tpu.memory_space<any>> -> memref<1x128xf32, #tpu.memory_space<any>>
      %c0_i32_22 = arith.constant 0 : i32
      %45 = tpu.memref_slice %arg6[%0, %c2_i32_20, %c0_i32_22] : memref<2x8x128xf32, #tpu.memory_space<vmem>> -> memref<1x1x128xf32, #tpu.memory_space<vmem>>
      %46 = tpu.memref_squeeze %45 : memref<1x1x128xf32, #tpu.memory_space<vmem>> -> memref<1x128xf32, #tpu.memory_space<vmem>>
      %47 = tpu.memref_slice %arg7[%0] : memref<2x!tpu.dma_semaphore, #tpu.memory_space<semaphore_mem>> -> memref<1x!tpu.dma_semaphore, #tpu.memory_space<semaphore_mem>>
      %48 = tpu.memref_squeeze %47 : memref<1x!tpu.dma_semaphore, #tpu.memory_space<semaphore_mem>> -> memref<!tpu.dma_semaphore, #tpu.memory_space<semaphore_mem>>
      tpu.enqueue_dma source(%44 : memref<1x128xf32, #tpu.memory_space<any>>) target(%46 : memref<1x128xf32, #tpu.memory_space<vmem>>) target_semaphore(%48 : memref<!tpu.dma_semaphore, #tpu.memory_space<semaphore_mem>>)
      %c3_i32 = arith.constant 3 : i32
      %49 = arith.addi %24, %c3_i32 : i32
      %50 = arith.index_cast %49 : i32 to index
      %51 = memref.load %arg2[%50] : memref<16xi32, #tpu.memory_space<smem>>
      %c0_i32_23 = arith.constant 0 : i32
      %52 = tpu.memref_slice %arg4[%51, %c0_i32_23] : memref<64x128xf32, #tpu.memory_space<any>> -> memref<1x128xf32, #tpu.memory_space<any>>
      %c0_i32_24 = arith.constant 0 : i32
      %53 = tpu.memref_slice %arg6[%0, %c3_i32, %c0_i32_24] : memref<2x8x128xf32, #tpu.memory_space<vmem>> -> memref<1x1x128xf32, #tpu.memory_space<vmem>>
      %54 = tpu.memref_squeeze %53 : memref<1x1x128xf32, #tpu.memory_space<vmem>> -> memref<1x128xf32, #tpu.memory_space<vmem>>
      %55 = tpu.memref_slice %arg7[%0] : memref<2x!tpu.dma_semaphore, #tpu.memory_space<semaphore_mem>> -> memref<1x!tpu.dma_semaphore, #tpu.memory_space<semaphore_mem>>
      %56 = tpu.memref_squeeze %55 : memref<1x!tpu.dma_semaphore, #tpu.memory_space<semaphore_mem>> -> memref<!tpu.dma_semaphore, #tpu.memory_space<semaphore_mem>>
      tpu.enqueue_dma source(%52 : memref<1x128xf32, #tpu.memory_space<any>>) target(%54 : memref<1x128xf32, #tpu.memory_space<vmem>>) target_semaphore(%56 : memref<!tpu.dma_semaphore, #tpu.memory_space<semaphore_mem>>)
      %c4_i32 = arith.constant 4 : i32
      %57 = arith.addi %24, %c4_i32 : i32
      %58 = arith.index_cast %57 : i32 to index
      %59 = memref.load %arg2[%58] : memref<16xi32, #tpu.memory_space<smem>>
      %c0_i32_25 = arith.constant 0 : i32
      %60 = tpu.memref_slice %arg4[%59, %c0_i32_25] : memref<64x128xf32, #tpu.memory_space<any>> -> memref<1x128xf32, #tpu.memory_space<any>>
      %c0_i32_26 = arith.constant 0 : i32
      %61 = tpu.memref_slice %arg6[%0, %c4_i32, %c0_i32_26] : memref<2x8x128xf32, #tpu.memory_space<vmem>> -> memref<1x1x128xf32, #tpu.memory_space<vmem>>
      %62 = tpu.memref_squeeze %61 : memref<1x1x128xf32, #tpu.memory_space<vmem>> -> memref<1x128xf32, #tpu.memory_space<vmem>>
      %63 = tpu.memref_slice %arg7[%0] : memref<2x!tpu.dma_semaphore, #tpu.memory_space<semaphore_mem>> -> memref<1x!tpu.dma_semaphore, #tpu.memory_space<semaphore_mem>>
      %64 = tpu.memref_squeeze %63 : memref<1x!tpu.dma_semaphore, #tpu.memory_space<semaphore_mem>> -> memref<!tpu.dma_semaphore, #tpu.memory_space<semaphore_mem>>
      tpu.enqueue_dma source(%60 : memref<1x128xf32, #tpu.memory_space<any>>) target(%62 : memref<1x128xf32, #tpu.memory_space<vmem>>) target_semaphore(%64 : memref<!tpu.dma_semaphore, #tpu.memory_space<semaphore_mem>>)
      %c5_i32 = arith.constant 5 : i32
      %65 = arith.addi %24, %c5_i32 : i32
      %66 = arith.index_cast %65 : i32 to index
      %67 = memref.load %arg2[%66] : memref<16xi32, #tpu.memory_space<smem>>
      %c0_i32_27 = arith.constant 0 : i32
      %68 = tpu.memref_slice %arg4[%67, %c0_i32_27] : memref<64x128xf32, #tpu.memory_space<any>> -> memref<1x128xf32, #tpu.memory_space<any>>
      %c0_i32_28 = arith.constant 0 : i32
      %69 = tpu.memref_slice %arg6[%0, %c5_i32, %c0_i32_28] : memref<2x8x128xf32, #tpu.memory_space<vmem>> -> memref<1x1x128xf32, #tpu.memory_space<vmem>>
      %70 = tpu.memref_squeeze %69 : memref<1x1x128xf32, #tpu.memory_space<vmem>> -> memref<1x128xf32, #tpu.memory_space<vmem>>
      %71 = tpu.memref_slice %arg7[%0] : memref<2x!tpu.dma_semaphore, #tpu.memory_space<semaphore_mem>> -> memref<1x!tpu.dma_semaphore, #tpu.memory_space<semaphore_mem>>
      %72 = tpu.memref_squeeze %71 : memref<1x!tpu.dma_semaphore, #tpu.memory_space<semaphore_mem>> -> memref<!tpu.dma_semaphore, #tpu.memory_space<semaphore_mem>>
      tpu.enqueue_dma source(%68 : memref<1x128xf32, #tpu.memory_space<any>>) target(%70 : memref<1x128xf32, #tpu.memory_space<vmem>>) target_semaphore(%72 : memref<!tpu.dma_semaphore, #tpu.memory_space<semaphore_mem>>)
      %c6_i32 = arith.constant 6 : i32
      %73 = arith.addi %24, %c6_i32 : i32
      %74 = arith.index_cast %73 : i32 to index
      %75 = memref.load %arg2[%74] : memref<16xi32, #tpu.memory_space<smem>>
      %c0_i32_29 = arith.constant 0 : i32
      %76 = tpu.memref_slice %arg4[%75, %c0_i32_29] : memref<64x128xf32, #tpu.memory_space<any>> -> memref<1x128xf32, #tpu.memory_space<any>>
      %c0_i32_30 = arith.constant 0 : i32
      %77 = tpu.memref_slice %arg6[%0, %c6_i32, %c0_i32_30] : memref<2x8x128xf32, #tpu.memory_space<vmem>> -> memref<1x1x128xf32, #tpu.memory_space<vmem>>
      %78 = tpu.memref_squeeze %77 : memref<1x1x128xf32, #tpu.memory_space<vmem>> -> memref<1x128xf32, #tpu.memory_space<vmem>>
      %79 = tpu.memref_slice %arg7[%0] : memref<2x!tpu.dma_semaphore, #tpu.memory_space<semaphore_mem>> -> memref<1x!tpu.dma_semaphore, #tpu.memory_space<semaphore_mem>>
      %80 = tpu.memref_squeeze %79 : memref<1x!tpu.dma_semaphore, #tpu.memory_space<semaphore_mem>> -> memref<!tpu.dma_semaphore, #tpu.memory_space<semaphore_mem>>
      tpu.enqueue_dma source(%76 : memref<1x128xf32, #tpu.memory_space<any>>) target(%78 : memref<1x128xf32, #tpu.memory_space<vmem>>) target_semaphore(%80 : memref<!tpu.dma_semaphore, #tpu.memory_space<semaphore_mem>>)
      %c7_i32 = arith.constant 7 : i32
      %81 = arith.addi %24, %c7_i32 : i32
      %82 = arith.index_cast %81 : i32 to index
      %83 = memref.load %arg2[%82] : memref<16xi32, #tpu.memory_space<smem>>
      %c0_i32_31 = arith.constant 0 : i32
      %84 = tpu.memref_slice %arg4[%83, %c0_i32_31] : memref<64x128xf32, #tpu.memory_space<any>> -> memref<1x128xf32, #tpu.memory_space<any>>
      %c0_i32_32 = arith.constant 0 : i32
      %85 = tpu.memref_slice %arg6[%0, %c7_i32, %c0_i32_32] : memref<2x8x128xf32, #tpu.memory_space<vmem>> -> memref<1x1x128xf32, #tpu.memory_space<vmem>>
      %86 = tpu.memref_squeeze %85 : memref<1x1x128xf32, #tpu.memory_space<vmem>> -> memref<1x128xf32, #tpu.memory_space<vmem>>
      %87 = tpu.memref_slice %arg7[%0] : memref<2x!tpu.dma_semaphore, #tpu.memory_space<semaphore_mem>> -> memref<1x!tpu.dma_semaphore, #tpu.memory_space<semaphore_mem>>
      %88 = tpu.memref_squeeze %87 : memref<1x!tpu.dma_semaphore, #tpu.memory_space<semaphore_mem>> -> memref<!tpu.dma_semaphore, #tpu.memory_space<semaphore_mem>>
      tpu.enqueue_dma source(%84 : memref<1x128xf32, #tpu.memory_space<any>>) target(%86 : memref<1x128xf32, #tpu.memory_space<vmem>>) target_semaphore(%88 : memref<!tpu.dma_semaphore, #tpu.memory_space<semaphore_mem>>)
      %c8_i32_33 = arith.constant 8 : i32
    } else {
    }
    %c1_i32_1 = arith.constant 1 : i32
    %4 = arith.addi %arg1, %c1_i32_1 : i32
    %c2_i32 = arith.constant 2 : i32
    %5 = arith.cmpi slt, %4, %c2_i32 : i32
    %6 = arith.extui %5 : i1 to i32
    %c0_i32_2 = arith.constant 0 : i32
    %7 = arith.cmpi ne, %6, %c0_i32_2 : i32
    scf.if %7 {
      %c1_i32_13 = arith.constant 1 : i32
      %22 = arith.addi %arg1, %c1_i32_13 : i32
      %c1_i32_14 = arith.constant 1 : i32
      %23 = arith.subi %c1_i32_14, %0 : i32
      %c8_i32 = arith.constant 8 : i32
      %24 = arith.muli %22, %c8_i32 : i32
      %c8_i32_15 = arith.constant 8 : i32
      %25 = arith.muli %arg0, %c8_i32_15 : i32
      %26 = arith.addi %24, %25 : i32
      %c0_i32_16 = arith.constant 0 : i32
      %27 = arith.addi %26, %c0_i32_16 : i32
      %28 = arith.index_cast %27 : i32 to index
      %29 = memref.load %arg2[%28] : memref<16xi32, #tpu.memory_space<smem>>
      %c0_i32_17 = arith.constant 0 : i32
      %30 = tpu.memref_slice %arg4[%29, %c0_i32_17] : memref<64x128xf32, #tpu.memory_space<any>> -> memref<1x128xf32, #tpu.memory_space<any>>
      %c0_i32_18 = arith.constant 0 : i32
      %31 = tpu.memref_slice %arg6[%23, %c0_i32_16, %c0_i32_18] : memref<2x8x128xf32, #tpu.memory_space<vmem>> -> memref<1x1x128xf32, #tpu.memory_space<vmem>>
      %32 = tpu.memref_squeeze %31 : memref<1x1x128xf32, #tpu.memory_space<vmem>> -> memref<1x128xf32, #tpu.memory_space<vmem>>
      %33 = tpu.memref_slice %arg7[%23] : memref<2x!tpu.dma_semaphore, #tpu.memory_space<semaphore_mem>> -> memref<1x!tpu.dma_semaphore, #tpu.memory_space<semaphore_mem>>
      %34 = tpu.memref_squeeze %33 : memref<1x!tpu.dma_semaphore, #tpu.memory_space<semaphore_mem>> -> memref<!tpu.dma_semaphore, #tpu.memory_space<semaphore_mem>>
      tpu.enqueue_dma source(%30 : memref<1x128xf32, #tpu.memory_space<any>>) target(%32 : memref<1x128xf32, #tpu.memory_space<vmem>>) target_semaphore(%34 : memref<!tpu.dma_semaphore, #tpu.memory_space<semaphore_mem>>)
      %c1_i32_19 = arith.constant 1 : i32
      %35 = arith.addi %26, %c1_i32_19 : i32
      %36 = arith.index_cast %35 : i32 to index
      %37 = memref.load %arg2[%36] : memref<16xi32, #tpu.memory_space<smem>>
      %c0_i32_20 = arith.constant 0 : i32
      %38 = tpu.memref_slice %arg4[%37, %c0_i32_20] : memref<64x128xf32, #tpu.memory_space<any>> -> memref<1x128xf32, #tpu.memory_space<any>>
      %c0_i32_21 = arith.constant 0 : i32
      %39 = tpu.memref_slice %arg6[%23, %c1_i32_19, %c0_i32_21] : memref<2x8x128xf32, #tpu.memory_space<vmem>> -> memref<1x1x128xf32, #tpu.memory_space<vmem>>
      %40 = tpu.memref_squeeze %39 : memref<1x1x128xf32, #tpu.memory_space<vmem>> -> memref<1x128xf32, #tpu.memory_space<vmem>>
      %41 = tpu.memref_slice %arg7[%23] : memref<2x!tpu.dma_semaphore, #tpu.memory_space<semaphore_mem>> -> memref<1x!tpu.dma_semaphore, #tpu.memory_space<semaphore_mem>>
      %42 = tpu.memref_squeeze %41 : memref<1x!tpu.dma_semaphore, #tpu.memory_space<semaphore_mem>> -> memref<!tpu.dma_semaphore, #tpu.memory_space<semaphore_mem>>
      tpu.enqueue_dma source(%38 : memref<1x128xf32, #tpu.memory_space<any>>) target(%40 : memref<1x128xf32, #tpu.memory_space<vmem>>) target_semaphore(%42 : memref<!tpu.dma_semaphore, #tpu.memory_space<semaphore_mem>>)
      %c2_i32_22 = arith.constant 2 : i32
      %43 = arith.addi %26, %c2_i32_22 : i32
      %44 = arith.index_cast %43 : i32 to index
      %45 = memref.load %arg2[%44] : memref<16xi32, #tpu.memory_space<smem>>
      %c0_i32_23 = arith.constant 0 : i32
      %46 = tpu.memref_slice %arg4[%45, %c0_i32_23] : memref<64x128xf32, #tpu.memory_space<any>> -> memref<1x128xf32, #tpu.memory_space<any>>
      %c0_i32_24 = arith.constant 0 : i32
      %47 = tpu.memref_slice %arg6[%23, %c2_i32_22, %c0_i32_24] : memref<2x8x128xf32, #tpu.memory_space<vmem>> -> memref<1x1x128xf32, #tpu.memory_space<vmem>>
      %48 = tpu.memref_squeeze %47 : memref<1x1x128xf32, #tpu.memory_space<vmem>> -> memref<1x128xf32, #tpu.memory_space<vmem>>
      %49 = tpu.memref_slice %arg7[%23] : memref<2x!tpu.dma_semaphore, #tpu.memory_space<semaphore_mem>> -> memref<1x!tpu.dma_semaphore, #tpu.memory_space<semaphore_mem>>
      %50 = tpu.memref_squeeze %49 : memref<1x!tpu.dma_semaphore, #tpu.memory_space<semaphore_mem>> -> memref<!tpu.dma_semaphore, #tpu.memory_space<semaphore_mem>>
      tpu.enqueue_dma source(%46 : memref<1x128xf32, #tpu.memory_space<any>>) target(%48 : memref<1x128xf32, #tpu.memory_space<vmem>>) target_semaphore(%50 : memref<!tpu.dma_semaphore, #tpu.memory_space<semaphore_mem>>)
      %c3_i32 = arith.constant 3 : i32
      %51 = arith.addi %26, %c3_i32 : i32
      %52 = arith.index_cast %51 : i32 to index
      %53 = memref.load %arg2[%52] : memref<16xi32, #tpu.memory_space<smem>>
      %c0_i32_25 = arith.constant 0 : i32
      %54 = tpu.memref_slice %arg4[%53, %c0_i32_25] : memref<64x128xf32, #tpu.memory_space<any>> -> memref<1x128xf32, #tpu.memory_space<any>>
      %c0_i32_26 = arith.constant 0 : i32
      %55 = tpu.memref_slice %arg6[%23, %c3_i32, %c0_i32_26] : memref<2x8x128xf32, #tpu.memory_space<vmem>> -> memref<1x1x128xf32, #tpu.memory_space<vmem>>
      %56 = tpu.memref_squeeze %55 : memref<1x1x128xf32, #tpu.memory_space<vmem>> -> memref<1x128xf32, #tpu.memory_space<vmem>>
      %57 = tpu.memref_slice %arg7[%23] : memref<2x!tpu.dma_semaphore, #tpu.memory_space<semaphore_mem>> -> memref<1x!tpu.dma_semaphore, #tpu.memory_space<semaphore_mem>>
      %58 = tpu.memref_squeeze %57 : memref<1x!tpu.dma_semaphore, #tpu.memory_space<semaphore_mem>> -> memref<!tpu.dma_semaphore, #tpu.memory_space<semaphore_mem>>
      tpu.enqueue_dma source(%54 : memref<1x128xf32, #tpu.memory_space<any>>) target(%56 : memref<1x128xf32, #tpu.memory_space<vmem>>) target_semaphore(%58 : memref<!tpu.dma_semaphore, #tpu.memory_space<semaphore_mem>>)
      %c4_i32 = arith.constant 4 : i32
      %59 = arith.addi %26, %c4_i32 : i32
      %60 = arith.index_cast %59 : i32 to index
      %61 = memref.load %arg2[%60] : memref<16xi32, #tpu.memory_space<smem>>
      %c0_i32_27 = arith.constant 0 : i32
      %62 = tpu.memref_slice %arg4[%61, %c0_i32_27] : memref<64x128xf32, #tpu.memory_space<any>> -> memref<1x128xf32, #tpu.memory_space<any>>
      %c0_i32_28 = arith.constant 0 : i32
      %63 = tpu.memref_slice %arg6[%23, %c4_i32, %c0_i32_28] : memref<2x8x128xf32, #tpu.memory_space<vmem>> -> memref<1x1x128xf32, #tpu.memory_space<vmem>>
      %64 = tpu.memref_squeeze %63 : memref<1x1x128xf32, #tpu.memory_space<vmem>> -> memref<1x128xf32, #tpu.memory_space<vmem>>
      %65 = tpu.memref_slice %arg7[%23] : memref<2x!tpu.dma_semaphore, #tpu.memory_space<semaphore_mem>> -> memref<1x!tpu.dma_semaphore, #tpu.memory_space<semaphore_mem>>
      %66 = tpu.memref_squeeze %65 : memref<1x!tpu.dma_semaphore, #tpu.memory_space<semaphore_mem>> -> memref<!tpu.dma_semaphore, #tpu.memory_space<semaphore_mem>>
      tpu.enqueue_dma source(%62 : memref<1x128xf32, #tpu.memory_space<any>>) target(%64 : memref<1x128xf32, #tpu.memory_space<vmem>>) target_semaphore(%66 : memref<!tpu.dma_semaphore, #tpu.memory_space<semaphore_mem>>)
      %c5_i32 = arith.constant 5 : i32
      %67 = arith.addi %26, %c5_i32 : i32
      %68 = arith.index_cast %67 : i32 to index
      %69 = memref.load %arg2[%68] : memref<16xi32, #tpu.memory_space<smem>>
      %c0_i32_29 = arith.constant 0 : i32
      %70 = tpu.memref_slice %arg4[%69, %c0_i32_29] : memref<64x128xf32, #tpu.memory_space<any>> -> memref<1x128xf32, #tpu.memory_space<any>>
      %c0_i32_30 = arith.constant 0 : i32
      %71 = tpu.memref_slice %arg6[%23, %c5_i32, %c0_i32_30] : memref<2x8x128xf32, #tpu.memory_space<vmem>> -> memref<1x1x128xf32, #tpu.memory_space<vmem>>
      %72 = tpu.memref_squeeze %71 : memref<1x1x128xf32, #tpu.memory_space<vmem>> -> memref<1x128xf32, #tpu.memory_space<vmem>>
      %73 = tpu.memref_slice %arg7[%23] : memref<2x!tpu.dma_semaphore, #tpu.memory_space<semaphore_mem>> -> memref<1x!tpu.dma_semaphore, #tpu.memory_space<semaphore_mem>>
      %74 = tpu.memref_squeeze %73 : memref<1x!tpu.dma_semaphore, #tpu.memory_space<semaphore_mem>> -> memref<!tpu.dma_semaphore, #tpu.memory_space<semaphore_mem>>
      tpu.enqueue_dma source(%70 : memref<1x128xf32, #tpu.memory_space<any>>) target(%72 : memref<1x128xf32, #tpu.memory_space<vmem>>) target_semaphore(%74 : memref<!tpu.dma_semaphore, #tpu.memory_space<semaphore_mem>>)
      %c6_i32 = arith.constant 6 : i32
      %75 = arith.addi %26, %c6_i32 : i32
      %76 = arith.index_cast %75 : i32 to index
      %77 = memref.load %arg2[%76] : memref<16xi32, #tpu.memory_space<smem>>
      %c0_i32_31 = arith.constant 0 : i32
      %78 = tpu.memref_slice %arg4[%77, %c0_i32_31] : memref<64x128xf32, #tpu.memory_space<any>> -> memref<1x128xf32, #tpu.memory_space<any>>
      %c0_i32_32 = arith.constant 0 : i32
      %79 = tpu.memref_slice %arg6[%23, %c6_i32, %c0_i32_32] : memref<2x8x128xf32, #tpu.memory_space<vmem>> -> memref<1x1x128xf32, #tpu.memory_space<vmem>>
      %80 = tpu.memref_squeeze %79 : memref<1x1x128xf32, #tpu.memory_space<vmem>> -> memref<1x128xf32, #tpu.memory_space<vmem>>
      %81 = tpu.memref_slice %arg7[%23] : memref<2x!tpu.dma_semaphore, #tpu.memory_space<semaphore_mem>> -> memref<1x!tpu.dma_semaphore, #tpu.memory_space<semaphore_mem>>
      %82 = tpu.memref_squeeze %81 : memref<1x!tpu.dma_semaphore, #tpu.memory_space<semaphore_mem>> -> memref<!tpu.dma_semaphore, #tpu.memory_space<semaphore_mem>>
      tpu.enqueue_dma source(%78 : memref<1x128xf32, #tpu.memory_space<any>>) target(%80 : memref<1x128xf32, #tpu.memory_space<vmem>>) target_semaphore(%82 : memref<!tpu.dma_semaphore, #tpu.memory_space<semaphore_mem>>)
      %c7_i32 = arith.constant 7 : i32
      %83 = arith.addi %26, %c7_i32 : i32
      %84 = arith.index_cast %83 : i32 to index
      %85 = memref.load %arg2[%84] : memref<16xi32, #tpu.memory_space<smem>>
      %c0_i32_33 = arith.constant 0 : i32
      %86 = tpu.memref_slice %arg4[%85, %c0_i32_33] : memref<64x128xf32, #tpu.memory_space<any>> -> memref<1x128xf32, #tpu.memory_space<any>>
      %c0_i32_34 = arith.constant 0 : i32
      %87 = tpu.memref_slice %arg6[%23, %c7_i32, %c0_i32_34] : memref<2x8x128xf32, #tpu.memory_space<vmem>> -> memref<1x1x128xf32, #tpu.memory_space<vmem>>
      %88 = tpu.memref_squeeze %87 : memref<1x1x128xf32, #tpu.memory_space<vmem>> -> memref<1x128xf32, #tpu.memory_space<vmem>>
      %89 = tpu.memref_slice %arg7[%23] : memref<2x!tpu.dma_semaphore, #tpu.memory_space<semaphore_mem>> -> memref<1x!tpu.dma_semaphore, #tpu.memory_space<semaphore_mem>>
      %90 = tpu.memref_squeeze %89 : memref<1x!tpu.dma_semaphore, #tpu.memory_space<semaphore_mem>> -> memref<!tpu.dma_semaphore, #tpu.memory_space<semaphore_mem>>
      tpu.enqueue_dma source(%86 : memref<1x128xf32, #tpu.memory_space<any>>) target(%88 : memref<1x128xf32, #tpu.memory_space<vmem>>) target_semaphore(%90 : memref<!tpu.dma_semaphore, #tpu.memory_space<semaphore_mem>>)
      %c8_i32_35 = arith.constant 8 : i32
    } else {
    }
    %c0_i32_3 = arith.constant 0 : i32
    %c0_i32_4 = arith.constant 0 : i32
    %8 = tpu.memref_slice %arg6[%0, %c0_i32_3, %c0_i32_4] : memref<2x8x128xf32, #tpu.memory_space<vmem>> -> memref<1x8x128xf32, #tpu.memory_space<vmem>>
    %9 = tpu.memref_squeeze %8 : memref<1x8x128xf32, #tpu.memory_space<vmem>> -> memref<8x128xf32, #tpu.memory_space<vmem>>
    %c0_i32_5 = arith.constant 0 : i32
    %c0_i32_6 = arith.constant 0 : i32
    %10 = tpu.memref_slice %arg6[%0, %c0_i32_5, %c0_i32_6] : memref<2x8x128xf32, #tpu.memory_space<vmem>> -> memref<1x8x128xf32, #tpu.memory_space<vmem>>
    %11 = tpu.memref_squeeze %10 : memref<1x8x128xf32, #tpu.memory_space<vmem>> -> memref<8x128xf32, #tpu.memory_space<vmem>>
    %12 = tpu.memref_slice %arg7[%0] : memref<2x!tpu.dma_semaphore, #tpu.memory_space<semaphore_mem>> -> memref<1x!tpu.dma_semaphore, #tpu.memory_space<semaphore_mem>>
    %13 = tpu.memref_squeeze %12 : memref<1x!tpu.dma_semaphore, #tpu.memory_space<semaphore_mem>> -> memref<!tpu.dma_semaphore, #tpu.memory_space<semaphore_mem>>
    tpu.wait_dma2 semaphore(%13 : memref<!tpu.dma_semaphore, #tpu.memory_space<semaphore_mem>>) src(%9 : memref<8x128xf32, #tpu.memory_space<vmem>>) dst(%11 : memref<8x128xf32, #tpu.memory_space<vmem>>)
    %14 = arith.index_cast %0 : i32 to index
    %c0 = arith.constant 0 : index
    %c0_7 = arith.constant 0 : index
    %15 = vector.load %arg6[%14, %c0, %c0_7] : memref<2x8x128xf32, #tpu.memory_space<vmem>>, vector<1x8x128xf32>
    %16 = vector.shape_cast %15 : vector<1x8x128xf32> to vector<8x128xf32>
    %c0_8 = arith.constant 0 : index
    %c0_9 = arith.constant 0 : index
    %17 = vector.load %arg3[%c0_8, %c0_9] : memref<8x128xf32, #tpu.memory_space<vmem>>, vector<8x128xf32>
    %18 = arith.addf %16, %17 : vector<8x128xf32>
    %c0_10 = arith.constant 0 : index
    %c0_11 = arith.constant 0 : index
    %c0_12 = arith.constant 0 : index
    %19 = vector.load %arg5[%c0_10, %c0_11, %c0_12] : memref<1x8x128xf32, #tpu.memory_space<vmem>>, vector<1x8x128xf32>
    %20 = vector.shape_cast %19 : vector<1x8x128xf32> to vector<8x128xf32>
    %21 = vector.shape_cast %18 : vector<8x128xf32> to vector<1x8x128xf32>
    tpu.vector_store %arg5[%c0_10, %c0_11, %c0_12], %21 {strides = array<i32>} : memref<1x8x128xf32, #tpu.memory_space<vmem>>, vector<1x8x128xf32>,
    return
  }
  func.func @transform_0(%arg0: i32, %arg1: i32, %arg2: memref<16xi32, #tpu.memory_space<smem>>) -> (i32, i32) {
    %c0_i32 = arith.constant 0 : i32
    %c0_i32_0 = arith.constant 0 : i32
    return %arg0, %c0_i32 : i32, i32
  }
  func.func @transform_2(%arg0: i32, %arg1: i32, %arg2: memref<16xi32, #tpu.memory_space<smem>>) -> (i32, i32, i32) {
    %c0_i32 = arith.constant 0 : i32
    %c0_i32_0 = arith.constant 0 : i32
    return %arg1, %arg0, %c0_i32 : i32, i32, i32
  }
}

</mosaic_0001>

<bundles_post_ra>
// kernel: tpu_custom_call.1
= control target key start
LH: loop header
LB: loop body
LE: loop exit
PB: predicated region body
PF: predicated region fallthrough
CT: control target
= control target key end

     0   :  { %s1356_s15 = smov [#allocation5]   ;;  %s1885_s0 = inlined_call_operand.hbm [shape: s32[16], index: 0, kind: input, shape index: {}]   ;;  %s1886_s1 = inlined_call_operand.hbm [shape: f32[8,128], index: 1, kind: input, shape index: {}]   ;;  %s1887_s2 = inlined_call_operand.hbm [shape: f32[64,128], index: 2, kind: input, shape index: {}]   ;;  %s1888_s3 = inlined_call_operand.hbm [shape: f32[2,8,128], index: 3, kind: output, shape index: {}]  }
   0x1   :  { %1903 = sst [smem:[#allocation74_spill]] %s1886_s1  ;;  %s9_s14 = sshll.u32 %s1885_s0, 4  ;;  %s10_s14 = int_to_ptr.hbm [resolvable:$true] %s9_s14 }
   0x2   :  { %12 = dma.hbm_to_smem %s10_s14, 16, %s1356_s15, [#allocation4] }
   0x3   :  { %1320 = dma.done.wait [#allocation4], 16 }
   0x4   :  { %1321 = vsyncadd [#allocation4], 4294967280 }
   0x5   :  { %15 = sfence }
   0x6   :  { %16 = vsyncpa [#allocation7], 0 }
   0x7   :  { %17 = vsyncpa [#allocation8], 0 }
   0x8   :  { %19 = vsyncpa [#allocation8 + $0x1], 0  ;;  %s1381_s16 = smov 0   ;;  %s1383_s17 = smov 0  }
   0x9   :  { %s1385_s18 = smov 0   ;;  %s1387_s19 = smov 0  }
   0xa   :  { %s1389_s20 = smov 0   ;;  %s1391_s0 = smov 0  }
   0xb LB: > { %1904 = sst [smem:[#allocation64_spill]] %s1334_s16  ;;  %s623_s21 = sadd.s32 4294967295, %s1354_s0   ;;  %s1354_s0 = sphi %s1391_s0, %s25_s0   ;;  %s1350_s20 = sphi %s1389_s20, %s1939_s20   ;;  %s1346_s19 = sphi %s1387_s19, %s1938_s19   ;;  %s1342_s18 = sphi %s1385_s18, %s1937_s18   ;;  %s1338_s17 = sphi %s1383_s17, %s1941_s17   ;;  %s1334_s16 = sphi %s1381_s16, %s1940_s16  }
   0xc   : > { %1905 = sst [smem:[#allocation65_spill]] %s1342_s18  ;;  %s624_s22 = sadd.s32 4294967294, %s1354_s0  }
   0xd   : > { %1906 = sst [smem:[#allocation66_spill]] %s1350_s20  ;;  %s34_s23 = sadd.s32 1, %s1350_s20 }
   0xe   : > { %1907 = sst [smem:[#allocation67_spill]] %s1354_s0  ;;  %s72_s24 = sadd.s32 1, %s1342_s18 }
   0xf   : > { %p35_p0 = scmp.ge.s32.totalorder %s34_s23, 2  ;;  %p82_p1 = scmp.ne.s32.totalorder %s1342_s18, %s1338_s17 }
  0x10   : > { %p83_p2 = scmp.eq.s32.totalorder %s623_s21, 1  ;;  %p88_p3 = scmp.ne.s32.totalorder %s1338_s17, %s1334_s16 }
  0x11   : > { %s1943_s23 = smov (%p35_p0, %s34_s23), 0  ;;  %p89_p5 = scmp.eq.s32.totalorder %s624_s22, 1 }
  0x12   : > { %1908 = sst [smem:[#allocation68_spill]] %s1943_s23  ;;  %p1421_p4 = por %p83_p2, %p82_p1 }
  0x13   : > { %s67_s26 = ssub.s32 %s1350_s20, %s1943_s23  ;;  %p625_p6 = scmp.ge.s32.totalorder %s1354_s0, 1 }
  0x14   : > { %p70_p7 = scmp.eq.s32.totalorder %s67_s26, 0  ;;  %p1428_p8 = por %p89_p5, %p88_p3 }
  0x15   : > { %p96_p9 = scmp.lt.s32.totalorder %s1354_s0, 3  ;;  %p723_p11 = scmp.eq.s32.totalorder %s623_s21, 0 }
  0x16   : > { %s1910_s27 = scalar_select %p1428_p8, 1, 0 }
  0x17   : > { %s1434_s28 = scalar_select %p70_p7, %s1342_s18, %s72_s24  }
  0x18   : > { %1911 = sst [smem:[#allocation69_spill]] %s1910_s27  ;;  %p97_p10 = pnand %p625_p6, %p96_p9 }
  0x19   : > { %1912 = sst [smem:[#allocation70_spill]] %s1434_s28  ;;  %s1357_s5 = smov [#allocation6]  }
  0x1a   : > { %s1913_s1 = sld [smem:[#allocation74_spill]]  ;;  %p715_p12 = pneg %p97_p10 }
  0x1b   : > { %s112_s6 = sshll.u32 %s1357_s5, 4  ;;  %s113_s6 = int_to_ptr.vmem [resolvable:$true] %s112_s6 }
  0x1c   : > { %p716_p13 = pnand %p723_p11, %p715_p12 }
  0x1d   : > { %125 = sbr.rel (%p97_p10) target bundleno = 330 (0x14a), region = 24 }
  0x20   : > { %s110_s4 = sshll.u32 %s1913_s1, 4  ;;  %s111_s4 = int_to_ptr.hbm [resolvable:$true] %s110_s4 }
  0x21   : > { %718 = dma.hbm_to_vmem [thread:$0]  (!%p716_p13), %s111_s4, 128, %s113_s6, [#allocation7]  }
  0x22   : > { %1323 = dma.done.wait (%p723_p11), [#allocation7], 128  }
  0x23   : > { %1325 = vsyncadd (%p723_p11), [#allocation7], 4294967168  ;;  %s1889_s7 = sand.u32 1, %s1338_s17   ;;  %s1441_s8 = sand.u32 1, %s1346_s19 }
  0x24   : > { %s1445_s9 = sshll.u32 %s1889_s7, 3  ;;  %p725_p0 = scmp.eq.s32.totalorder %s1346_s19, 0 }
  0x25   : > { %s1449_s10 = sshll.u32 %s1346_s19, 3  ;;  %s632_s11 = sshll.u32 %s1441_s8, 3 }
  0x26   : > { %s664_s12 = scalar_select %p725_p0, [#allocation5], [#allocation44] }
  0x27   : > { %s665_s13 = scalar_select %p725_p0, %s1449_s10, 0 }
  0x28   : > { %s1457_s15 = scalar_lea.vmem [#allocation2], %s632_s11  ;;  %s167_s22 = sadd.s32 1, %s1449_s10 }
  0x29   : > { %s149_s14 = sld [smem:[%s664_s12 + %s665_s13]]  ;;  %s163_s21 = sshll.u32 %s1457_s15, 4  ;;  %s164_s21 = int_to_ptr.vmem [resolvable:$true] %s163_s21 }
  0x2a   : > { %s667_s24 = scalar_select %p725_p0, [#allocation5], [#allocation45] }
  0x2b   : > { %s1945_s22 = smov (!%p725_p0, %s167_s22), 0  ;;  %s522_s26 = scalar_lea.vmem %s1457_s15, 1 [#allocation2] }
  0x2c   : > { %s168_s30 = sld [smem:[%s667_s24 + %s1945_s22]]  ;;  %s1467_s4 = sshll.u32 %s522_s26, 4  ;;  %s182_s4 = int_to_ptr.vmem [resolvable:$true] %s1467_s4 }
  0x2d   : > { %s526_s13 = scalar_lea.vmem %s1457_s15, 2 [#allocation2]  ;;  %s1477_s1 = scalar_lea.sflag [#allocation3], %s1441_s8 }
  0x2e   : > { %s1474_s7 = sshll.u32 %s526_s13, 4  ;;  %s1484_s26 = scalar_lea.hbm %s1887_s2, 64 }
  0x2f   : > { %s150_s11 = scalar_lea.hbm %s1887_s2, %s149_s14  ;;  %1914 = sst [smem:[#allocation71_spill]] %s1474_s7 }
  0x30   : > { %s161_s12 = sshll.u32 %s150_s11, 4  ;;  %s162_s12 = int_to_ptr.hbm [resolvable:$true] %s161_s12 }
  0x31   : > { %s820_s23 = sshra.s32 %s162_s12, 4  ;;  %s821_s23 = int_to_ptr.hbm [resolvable:$true] %s820_s23 }
  0x32   : > { %s822_s20 = scalar_lea.hbm %s821_s23, 1  ;;  %p827_p5 = scmp.lt.s32.totalorder %s821_s23, %s1887_s2 }
  0x33   : > { %p823_p1 = scmp.ne.s32.totalorder %s821_s23, %s822_s20  ;;  %p828_p6 = scmp.lt.s32.totalorder %s1484_s26, %s822_s20 }
  0x35   : > { %p824_p2 = pnand %p823_p1, %p725_p0  ;;  %p829_p7 = por %p828_p6, %p827_p5 }
  0x37   : > { %p825_p3 = pneg %p824_p2 }
  0x39   : > { %p830_p9 = pnand %p829_p7, %p825_p3 }
  0x3b   : > { %833 = shalt.err (!%p830_p9)  }
  0x3c   : > { %666 = dma.hbm_to_vmem [thread:$0]  (%p725_p0), %s162_s12, 16, %s164_s21, %s1477_s1 }
  0x3d   : > { %s670_s6 = scalar_select %p725_p0, [#allocation5], [#allocation46] }
  0x3e   : > { %s169_s23 = scalar_lea.hbm %s1887_s2, %s168_s30  ;;  %s203_s22 = sadd.s32 3, %s1449_s10 }
  0x3f   : > { %s179_s20 = sshll.u32 %s169_s23, 4  ;;  %s530_s24 = scalar_lea.vmem %s1457_s15, 3 [#allocation2]  ;;  %s180_s20 = int_to_ptr.hbm [resolvable:$true] %s179_s20 }
  0x40   : > { %s848_s14 = sshra.s32 %s180_s20, 4  ;;  %s849_s14 = int_to_ptr.hbm [resolvable:$true] %s848_s14 }
  0x41   : > { %s850_s5 = scalar_lea.hbm %s849_s14, 1  ;;  %p855_p13 = scmp.lt.s32.totalorder %s849_s14, %s1887_s2 }
  0x42   : > { %p851_p10 = scmp.ne.s32.totalorder %s849_s14, %s850_s5  ;;  %p856_p1 = scmp.lt.s32.totalorder %s1484_s26, %s850_s5 }
  0x44   : > { %p852_p11 = pnand %p851_p10, %p725_p0  ;;  %p857_p2 = por %p856_p1, %p855_p13 }
  0x46   : > { %p853_p12 = pneg %p852_p11 }
  0x48   : > { %p858_p3 = pnand %p857_p2, %p853_p12 }
  0x4a   : > { %861 = shalt.err (!%p858_p3)  }
  0x4b   : > { %669 = dma.hbm_to_vmem [thread:$0]  (%p725_p0), %s180_s20, 16, %s182_s4, %s1477_s1 }
  0x4c   : > { %s1915_s29 = sadd.s32 2, %s1449_s10  ;;  %s1518_s11 = sshll.u32 %s530_s24, 4 }
  0x4d   : > { %s1947_s29 = smov (!%p725_p0, %s1915_s29), 0  ;;  %1916 = sst [smem:[#allocation72_spill]] %s1518_s11 }
  0x4e   : > { %s673_s30 = scalar_select %p725_p0, [#allocation5], [#allocation47] }
  0x4f   : > { %s186_s12 = sld [smem:[%s670_s6 + %s1947_s29]]  ;;  %s1949_s22 = smov (!%p725_p0, %s203_s22), 0 }
  0x50   : > { %s221_s13 = sadd.s32 4, %s1449_s10  ;;  %s204_s23 = sld [smem:[%s673_s30 + %s1949_s22]] }
  0x51   : > { %s534_s14 = scalar_lea.vmem %s1457_s15, 4 [#allocation2]  ;;  %s1951_s13 = smov (!%p725_p0, %s221_s13), 0 }
  0x52   : > { %s676_s5 = scalar_select %p725_p0, [#allocation5], [#allocation48] }
  0x53   : > { %s1532_s6 = sshll.u32 %s534_s14, 4 }
  0x54   : > { %1917 = sst [smem:[#allocation73_spill]] %s1532_s6 }
  0x55   : > { %s187_s21 = scalar_lea.hbm %s1887_s2, %s186_s12  ;;  %s1534_s29 = sld [smem:[%s676_s5 + %s1951_s13]] }
  0x56   : > { %s197_s24 = sshll.u32 %s187_s21, 4  ;;  %s198_s24 = int_to_ptr.hbm [resolvable:$true] %s197_s24 }
  0x57   : > { %s876_s11 = sshra.s32 %s198_s24, 4  ;;  %s877_s11 = int_to_ptr.hbm [resolvable:$true] %s876_s11 }
  0x58   : > { %s878_s22 = scalar_lea.hbm %s877_s11, 1  ;;  %p883_p9 = scmp.lt.s32.totalorder %s877_s11, %s1887_s2 }
  0x59   : > { %p879_p5 = scmp.ne.s32.totalorder %s877_s11, %s878_s22  ;;  %p884_p10 = scmp.lt.s32.totalorder %s1484_s26, %s878_s22 }
  0x5b   : > { %p880_p6 = pnand %p879_p5, %p725_p0  ;;  %p885_p11 = por %p884_p10, %p883_p9 }
  0x5d   : > { %p881_p7 = pneg %p880_p6 }
  0x5f   : > { %p886_p12 = pnand %p885_p11, %p881_p7 }
  0x61   : > { %889 = shalt.err (!%p886_p12)  }
  0x62   : > { %s1918_s12 = sld [smem:[#allocation71_spill]]  ;;  %s205_s4 = scalar_lea.hbm %s1887_s2, %s204_s23 }
  0x63   : > { %s239_s7 = sadd.s32 5, %s1449_s10  ;;  %s215_s11 = sshll.u32 %s205_s4, 4  ;;  %s216_s11 = int_to_ptr.hbm [resolvable:$true] %s215_s11 }
  0x64   : > { %s538_s20 = scalar_lea.vmem %s1457_s15, 5 [#allocation2]  ;;  %s904_s22 = sshra.s32 %s216_s11, 4  ;;  %s905_s22 = int_to_ptr.hbm [resolvable:$true] %s904_s22 }
  0x65   : > { %s1553_s21 = sshll.u32 %s538_s20, 4  ;;  %s906_s30 = scalar_lea.hbm %s905_s22, 1 }
  0x66   : > { %1920 = sst [smem:[#allocation71_spill]] %s1553_s21  ;;  %p907_p13 = scmp.ne.s32.totalorder %s905_s22, %s906_s30 }
  0x67   : > { %p911_p3 = scmp.lt.s32.totalorder %s905_s22, %s1887_s2  ;;  %p912_p5 = scmp.lt.s32.totalorder %s1484_s26, %s906_s30 }
  0x68   : > { %s1919_s13 = int_to_ptr.vmem [resolvable:$true] %s1918_s12  ;;  %p908_p1 = pnand %p907_p13, %p725_p0 }
  0x69   : > { %672 = dma.hbm_to_vmem [thread:$0]  (%p725_p0), %s198_s24, 16, %s1919_s13, %s1477_s1 }
  0x6a   : > { %p909_p2 = pneg %p908_p1  ;;  %p913_p6 = por %p912_p5, %p911_p3 }
  0x6c   : > { %p914_p7 = pnand %p913_p6, %p909_p2 }
  0x6e   : > { %917 = shalt.err (!%p914_p7)  }
  0x6f   : > { %s1921_s23 = sld [smem:[#allocation72_spill]]  ;;  %s223_s6 = scalar_lea.hbm %s1887_s2, %s1534_s29 }
  0x70   : > { %s233_s5 = sshll.u32 %s223_s6, 4  ;;  %s257_s4 = sadd.s32 6, %s1449_s10  ;;  %s234_s5 = int_to_ptr.hbm [resolvable:$true] %s233_s5 }
  0x71   : > { %s542_s20 = scalar_lea.vmem %s1457_s15, 6 [#allocation2]  ;;  %s932_s22 = sshra.s32 %s234_s5, 4  ;;  %s933_s22 = int_to_ptr.hbm [resolvable:$true] %s932_s22 }
  0x72   : > { %s934_s30 = scalar_lea.hbm %s933_s22, 1  ;;  %p939_p12 = scmp.lt.s32.totalorder %s933_s22, %s1887_s2 }
  0x73   : > { %p935_p9 = scmp.ne.s32.totalorder %s933_s22, %s934_s30  ;;  %p940_p13 = scmp.lt.s32.totalorder %s1484_s26, %s934_s30 }
  0x75   : > { %s1922_s24 = int_to_ptr.vmem [resolvable:$true] %s1921_s23  ;;  %p936_p10 = pnand %p935_p9, %p725_p0 }
  0x76   : > { %675 = dma.hbm_to_vmem [thread:$0]  (%p725_p0), %s216_s11, 16, %s1922_s24, %s1477_s1 }
  0x77   : > { %p937_p11 = pneg %p936_p10  ;;  %p941_p1 = por %p940_p13, %p939_p12 }
  0x79   : > { %p942_p2 = pnand %p941_p1, %p937_p11 }
  0x7b   : > { %945 = shalt.err (!%p942_p2)  }
  0x7c   : > { %s1923_s29 = sld [smem:[#allocation73_spill]]  ;;  %s1953_s7 = smov (!%p725_p0, %s239_s7), 0 }
  0x7d   : > { %s679_s24 = scalar_select %p725_p0, [#allocation5], [#allocation49] }
  0x7e   : > { %s682_s13 = scalar_select %p725_p0, [#allocation5], [#allocation50] }
  0x7f   : > { %s240_s14 = sld [smem:[%s679_s24 + %s1953_s7]]  ;;  %s1592_s6 = sshll.u32 %s542_s20, 4 }
  0x80   : > { %1925 = sst [smem:[#allocation72_spill]] %s1592_s6  ;;  %s1955_s4 = smov (!%p725_p0, %s257_s4), 0 }
  0x81   : > { %s275_s22 = sadd.s32 7, %s1449_s10  ;;  %s258_s30 = sld [smem:[%s682_s13 + %s1955_s4]] }
  0x82   : > { %s1924_s11 = int_to_ptr.vmem [resolvable:$true] %s1923_s29  ;;  %s546_s12 = scalar_lea.vmem %s1457_s15, 7 [#allocation2] }
  0x83   : > { %678 = dma.hbm_to_vmem [thread:$0]  (%p725_p0), %s234_s5, 16, %s1924_s11, %s1477_s1 }
  0x84   : > { %s685_s5 = scalar_select %p725_p0, [#allocation5], [#allocation51] }
  0x85   : > { %s1957_s22 = smov (!%p725_p0, %s275_s22), 0  ;;  %s241_s11 = scalar_lea.hbm %s1887_s2, %s240_s14 }
  0x86   : > { %s1606_s7 = sshll.u32 %s546_s12, 4  ;;  %s251_s20 = sshll.u32 %s241_s11, 4  ;;  %s252_s20 = int_to_ptr.hbm [resolvable:$true] %s251_s20  ;;  %s290_s7 = int_to_ptr.vmem [resolvable:$true] %s1606_s7 }
  0x87   : > { %s1608_s24 = sld [smem:[%s685_s5 + %s1957_s22]]  ;;  %s960_s6 = sshra.s32 %s252_s20, 4  ;;  %s961_s6 = int_to_ptr.hbm [resolvable:$true] %s960_s6 }
  0x88   : > { %s962_s4 = scalar_lea.hbm %s961_s6, 1  ;;  %p967_p7 = scmp.lt.s32.totalorder %s961_s6, %s1887_s2 }
  0x89   : > { %p963_p3 = scmp.ne.s32.totalorder %s961_s6, %s962_s4  ;;  %p968_p9 = scmp.lt.s32.totalorder %s1484_s26, %s962_s4 }
  0x8b   : > { %p964_p5 = pnand %p963_p3, %p725_p0  ;;  %p969_p10 = por %p968_p9, %p967_p7 }
  0x8d   : > { %p965_p6 = pneg %p964_p5 }
  0x8f   : > { %p970_p11 = pnand %p969_p10, %p965_p6 }
  0x91   : > { %973 = shalt.err (!%p970_p11)  }
  0x92   : > { %s1926_s14 = sld [smem:[#allocation71_spill]]  ;;  %s259_s23 = scalar_lea.hbm %s1887_s2, %s258_s30 }
  0x93   : > { %s293_s29 = sadd.s32 1, %s1346_s19  ;;  %s269_s21 = sshll.u32 %s259_s23, 4  ;;  %s270_s21 = int_to_ptr.hbm [resolvable:$true] %s269_s21 }
  0x94   : > { %p1626_p12 = scmp.lt.s32.totalorder %s293_s29, 2  ;;  %s988_s11 = sshra.s32 %s270_s21, 4  ;;  %s989_s11 = int_to_ptr.hbm [resolvable:$true] %s988_s11 }
  0x95   : > { %s990_s4 = scalar_lea.hbm %s989_s11, 1  ;;  %p995_p3 = scmp.lt.s32.totalorder %s989_s11, %s1887_s2 }
  0x96   : > { %p991_p13 = scmp.ne.s32.totalorder %s989_s11, %s990_s4  ;;  %p996_p5 = scmp.lt.s32.totalorder %s1484_s26, %s990_s4 }
  0x98   : > { %s1927_s22 = int_to_ptr.vmem [resolvable:$true] %s1926_s14  ;;  %p992_p1 = pnand %p991_p13, %p725_p0 }
  0x99   : > { %681 = dma.hbm_to_vmem [thread:$0]  (%p725_p0), %s252_s20, 16, %s1927_s22, %s1477_s1 }
  0x9a   : > { %p993_p2 = pneg %p992_p1  ;;  %p997_p6 = por %p996_p5, %p995_p3 }
  0x9c   : > { %p998_p7 = pnand %p997_p6, %p993_p2 }
  0x9e   : > { %1001 = shalt.err (!%p998_p7)  }
  0x9f   : > { %s1929_s30 = sld [smem:[#allocation72_spill]]  ;;  %s277_s5 = scalar_lea.hbm %s1887_s2, %s1608_s24 }
  0xa0   : > { %s1897_s23 = ssub.s32 1, %s1441_s8  ;;  %s287_s29 = sshll.u32 %s277_s5, 4  ;;  %s288_s29 = int_to_ptr.hbm [resolvable:$true] %s287_s29 }
  0xa1   : > { %s1647_s11 = sadd.s32 8, %s1449_s10  ;;  %s642_s4 = sshll.u32 %s1897_s23, 3 }
  0xa2   : > { %s1016_s13 = sshra.s32 %s288_s29, 4  ;;  %s1017_s13 = int_to_ptr.hbm [resolvable:$true] %s1016_s13 }
  0xa3   : > { %s1018_s20 = scalar_lea.hbm %s1017_s13, 1  ;;  %p1023_p13 = scmp.lt.s32.totalorder %s1017_s13, %s1887_s2 }
  0xa4   : > { %p1019_p9 = scmp.ne.s32.totalorder %s1017_s13, %s1018_s20  ;;  %p1024_p1 = scmp.lt.s32.totalorder %s1484_s26, %s1018_s20 }
  0xa5   : > { %s1930_s14 = int_to_ptr.vmem [resolvable:$true] %s1929_s30 }
  0xa6   : > { %684 = dma.hbm_to_vmem [thread:$0]  (%p725_p0), %s270_s21, 16, %s1930_s14, %s1477_s1 }
  0xa7   : > { %p1020_p10 = pnand %p1019_p9, %p725_p0  ;;  %p1025_p2 = por %p1024_p1, %p1023_p13 }
  0xa9   : > { %p1021_p11 = pneg %p1020_p10 }
  0xab   : > { %p1026_p3 = pnand %p1025_p2, %p1021_p11 }
  0xad   : > { %1029 = shalt.err (!%p1026_p3)  }
  0xae   : > { %687 = dma.hbm_to_vmem [thread:$0]  (%p725_p0), %s288_s29, 16, %s290_s7, %s1477_s1 }
  0xaf   : > { %s689_s24 = scalar_select %p1626_p12, [#allocation5], [#allocation52] }
  0xb0   : > { %s690_s14 = scalar_select %p1626_p12, %s1647_s11, 0 }
  0xb1   : > { %s1667_s12 = scalar_lea.vmem [#allocation2], %s642_s4  ;;  %s320_s5 = sadd.s32 1, %s1647_s11 }
  0xb2   : > { %s302_s22 = sld [smem:[%s689_s24 + %s690_s14]]  ;;  %s316_s19 = sshll.u32 %s1667_s12, 4  ;;  %s317_s19 = int_to_ptr.vmem [resolvable:$true] %s316_s19 }
  0xb3   : > { %s692_s13 = scalar_select %p1626_p12, [#allocation5], [#allocation53] }
  0xb4   : > { %s1959_s5 = smov (!%p1626_p12, %s320_s5), 0  ;;  %s554_s20 = scalar_lea.vmem %s1667_s12, 1 [#allocation2] }
  0xb5   : > { %s321_s7 = sld [smem:[%s692_s13 + %s1959_s5]]  ;;  %s338_s4 = sadd.s32 2, %s1647_s11 }
  0xb6   : > { %s1680_s14 = sshll.u32 %s554_s20, 4  ;;  %s558_s23 = scalar_lea.vmem %s1667_s12, 2 [#allocation2]  ;;  %s335_s14 = int_to_ptr.vmem [resolvable:$true] %s1680_s14 }
  0xb7   : > { %s1931_s28 = ssub.s32 1, %s1441_s8 }
  0xb8   : > { %s303_s21 = scalar_lea.hbm %s1887_s2, %s302_s22  ;;  %s1685_s18 = scalar_lea.sflag [#allocation3], %s1931_s28 }
  0xb9   : > { %s314_s24 = sshll.u32 %s303_s21, 4  ;;  %s315_s24 = int_to_ptr.hbm [resolvable:$true] %s314_s24 }
  0xba   : > { %s1044_s27 = sshra.s32 %s315_s24, 4  ;;  %s1045_s27 = int_to_ptr.hbm [resolvable:$true] %s1044_s27 }
  0xbb   : > { %s1046_s16 = scalar_lea.hbm %s1045_s27, 1  ;;  %p1051_p7 = scmp.lt.s32.totalorder %s1045_s27, %s1887_s2 }
  0xbc   : > { %p1047_p0 = scmp.ne.s32.totalorder %s1045_s27, %s1046_s16  ;;  %p1052_p9 = scmp.lt.s32.totalorder %s1484_s26, %s1046_s16 }
  0xbe   : > { %p1048_p5 = pnand %p1047_p0, %p1626_p12  ;;  %p1053_p10 = por %p1052_p9, %p1051_p7 }
  0xc0   : > { %p1049_p6 = pneg %p1048_p5 }
  0xc2   : > { %p1054_p11 = pnand %p1053_p10, %p1049_p6 }
  0xc4   : > { %1057 = shalt.err (!%p1054_p11)  }
  0xc5   : > { %691 = dma.hbm_to_vmem [thread:$0]  (%p1626_p12), %s315_s24, 16, %s317_s19, %s1685_s18 }
  0xc6   : > { %s695_s28 = scalar_select %p1626_p12, [#allocation5], [#allocation54] }
  0xc7   : > { %s322_s20 = scalar_lea.hbm %s1887_s2, %s321_s7  ;;  %s1702_s27 = sshll.u32 %s558_s23, 4  ;;  %s353_s27 = int_to_ptr.vmem [resolvable:$true] %s1702_s27 }
  0xc8   : > { %s332_s16 = sshll.u32 %s322_s20, 4  ;;  %s356_s29 = sadd.s32 3, %s1647_s11  ;;  %s333_s16 = int_to_ptr.hbm [resolvable:$true] %s332_s16 }
  0xc9   : > { %s1072_s30 = sshra.s32 %s333_s16, 4  ;;  %s1073_s30 = int_to_ptr.hbm [resolvable:$true] %s1072_s30 }
  0xca   : > { %s1074_s21 = scalar_lea.hbm %s1073_s30, 1  ;;  %p1079_p3 = scmp.lt.s32.totalorder %s1073_s30, %s1887_s2 }
  0xcb   : > { %p1075_p13 = scmp.ne.s32.totalorder %s1073_s30, %s1074_s21  ;;  %p1080_p0 = scmp.lt.s32.totalorder %s1484_s26, %s1074_s21 }
  0xcd   : > { %p1076_p1 = pnand %p1075_p13, %p1626_p12  ;;  %p1081_p5 = por %p1080_p0, %p1079_p3 }
  0xcf   : > { %p1077_p2 = pneg %p1076_p1 }
  0xd1   : > { %p1082_p6 = pnand %p1081_p5, %p1077_p2 }
  0xd3   : > { %1085 = shalt.err (!%p1082_p6)  }
  0xd4   : > { %694 = dma.hbm_to_vmem [thread:$0]  (%p1626_p12), %s333_s16, 16, %s335_s14, %s1685_s18 }
  0xd5   : > { %s1961_s4 = smov (!%p1626_p12, %s338_s4), 0  ;;  %s1963_s29 = smov (!%p1626_p12, %s356_s29), 0 }
  0xd6   : > { %s698_s23 = scalar_select %p1626_p12, [#allocation5], [#allocation55] }
  0xd7   : > { %s339_s7 = sld [smem:[%s695_s28 + %s1961_s4]]  ;;  %s562_s5 = scalar_lea.vmem %s1667_s12, 3 [#allocation2] }
  0xd8   : > { %s374_s13 = sadd.s32 4, %s1647_s11  ;;  %s357_s8 = sld [smem:[%s698_s23 + %s1963_s29]] }
  0xd9   : > { %s566_s22 = scalar_lea.vmem %s1667_s12, 4 [#allocation2]  ;;  %s1965_s13 = smov (!%p1626_p12, %s374_s13), 0 }
  0xda   : > { %s701_s20 = scalar_select %p1626_p12, [#allocation5], [#allocation56] }
  0xdb   : > { %s1733_s21 = sshll.u32 %s562_s5, 4  ;;  %s1737_s19 = sshll.u32 %s566_s22, 4  ;;  %s371_s21 = int_to_ptr.vmem [resolvable:$true] %s1733_s21  ;;  %s389_s19 = int_to_ptr.vmem [resolvable:$true] %s1737_s19 }
  0xdc   : > { %s1735_s28 = sld [smem:[%s701_s20 + %s1965_s13]] }
  0xdd   : > { %s340_s30 = scalar_lea.hbm %s1887_s2, %s339_s7 }
  0xde   : > { %s350_s4 = sshll.u32 %s340_s30, 4  ;;  %s351_s4 = int_to_ptr.hbm [resolvable:$true] %s350_s4 }
  0xdf   : > { %s1100_s24 = sshra.s32 %s351_s4, 4  ;;  %s1101_s24 = int_to_ptr.hbm [resolvable:$true] %s1100_s24 }
  0xe0   : > { %s1102_s29 = scalar_lea.hbm %s1101_s24, 1  ;;  %p1107_p11 = scmp.lt.s32.totalorder %s1101_s24, %s1887_s2 }
  0xe1   : > { %p1103_p7 = scmp.ne.s32.totalorder %s1101_s24, %s1102_s29  ;;  %p1108_p13 = scmp.lt.s32.totalorder %s1484_s26, %s1102_s29 }
  0xe3   : > { %p1104_p9 = pnand %p1103_p7, %p1626_p12  ;;  %p1109_p1 = por %p1108_p13, %p1107_p11 }
  0xe5   : > { %p1105_p10 = pneg %p1104_p9 }
  0xe7   : > { %p1110_p2 = pnand %p1109_p1, %p1105_p10 }
  0xe9   : > { %1113 = shalt.err (!%p1110_p2)  }
  0xea   : > { %697 = dma.hbm_to_vmem [thread:$0]  (%p1626_p12), %s351_s4, 16, %s353_s27, %s1685_s18 }
  0xeb   : > { %s358_s13 = scalar_lea.hbm %s1887_s2, %s357_s8  ;;  %s570_s22 = scalar_lea.vmem %s1667_s12, 5 [#allocation2] }
  0xec   : > { %s368_s0 = sshll.u32 %s358_s13, 4  ;;  %s369_s0 = int_to_ptr.hbm [resolvable:$true] %s368_s0 }
  0xed   : > { %s1128_s20 = sshra.s32 %s369_s0, 4  ;;  %s1129_s20 = int_to_ptr.hbm [resolvable:$true] %s1128_s20 }
  0xee   : > { %s1130_s14 = scalar_lea.hbm %s1129_s20, 1  ;;  %p1135_p6 = scmp.lt.s32.totalorder %s1129_s20, %s1887_s2 }
  0xef   : > { %p1131_p3 = scmp.ne.s32.totalorder %s1129_s20, %s1130_s14  ;;  %p1136_p7 = scmp.lt.s32.totalorder %s1484_s26, %s1130_s14 }
  0xf1   : > { %p1132_p0 = pnand %p1131_p3, %p1626_p12  ;;  %p1137_p9 = por %p1136_p7, %p1135_p6 }
  0xf3   : > { %p1133_p5 = pneg %p1132_p0 }
  0xf5   : > { %p1138_p10 = pnand %p1137_p9, %p1133_p5 }
  0xf7   : > { %1141 = shalt.err (!%p1138_p10)  }
  0xf8   : > { %700 = dma.hbm_to_vmem [thread:$0]  (%p1626_p12), %s369_s0, 16, %s371_s21, %s1685_s18 }
  0xf9   : > { %s376_s4 = scalar_lea.hbm %s1887_s2, %s1735_s28  ;;  %s392_s24 = sadd.s32 5, %s1647_s11 }
  0xfa   : > { %s386_s29 = sshll.u32 %s376_s4, 4  ;;  %s1768_s23 = sshll.u32 %s570_s22, 4  ;;  %s387_s29 = int_to_ptr.hbm [resolvable:$true] %s386_s29  ;;  %s407_s23 = int_to_ptr.vmem [resolvable:$true] %s1768_s23 }
  0xfb   : > { %s410_s7 = sadd.s32 6, %s1647_s11  ;;  %s1156_s5 = sshra.s32 %s387_s29, 4  ;;  %s1157_s5 = int_to_ptr.hbm [resolvable:$true] %s1156_s5 }
  0xfc   : > { %s1158_s13 = scalar_lea.hbm %s1157_s5, 1  ;;  %p1163_p2 = scmp.lt.s32.totalorder %s1157_s5, %s1887_s2 }
  0xfd   : > { %p1159_p11 = scmp.ne.s32.totalorder %s1157_s5, %s1158_s13  ;;  %p1164_p3 = scmp.lt.s32.totalorder %s1484_s26, %s1158_s13 }
  0xff   : > { %p1160_p13 = pnand %p1159_p11, %p1626_p12  ;;  %p1165_p0 = por %p1164_p3, %p1163_p2 }
 0x101   : > { %p1161_p1 = pneg %p1160_p13 }
 0x103   : > { %p1166_p5 = pnand %p1165_p0, %p1161_p1 }
 0x105   : > { %1169 = shalt.err (!%p1166_p5)  }
 0x106   : > { %703 = dma.hbm_to_vmem [thread:$0]  (%p1626_p12), %s387_s29, 16, %s389_s19, %s1685_s18 }
 0x107   : > { %s704_s21 = scalar_select %p1626_p12, [#allocation5], [#allocation57] }
 0x108   : > { %s1967_s24 = smov (!%p1626_p12, %s392_s24), 0  ;;  %s1969_s7 = smov (!%p1626_p12, %s410_s7), 0 }
 0x109   : > { %s707_s28 = scalar_select %p1626_p12, [#allocation5], [#allocation58] }
 0x10a   : > { %s393_s0 = sld [smem:[%s704_s21 + %s1967_s24]]  ;;  %s428_s22 = sadd.s32 7, %s1647_s11 }
 0x10b   : > { %s411_s16 = sld [smem:[%s707_s28 + %s1969_s7]]  ;;  %s574_s30 = scalar_lea.vmem %s1667_s12, 6 [#allocation2] }
 0x10c   : > { %s710_s27 = scalar_select %p1626_p12, [#allocation5], [#allocation59] }
 0x10d   : > { %s1971_s22 = smov (!%p1626_p12, %s428_s22), 0  ;;  %s1800_s29 = sshll.u32 %s574_s30, 4  ;;  %s425_s29 = int_to_ptr.vmem [resolvable:$true] %s1800_s29 }
 0x10e   : > { %s1802_s24 = sld [smem:[%s710_s27 + %s1971_s22]]  ;;  %s578_s13 = scalar_lea.vmem %s1667_s12, 7 [#allocation2] }
 0x110   : > { %s394_s4 = scalar_lea.hbm %s1887_s2, %s393_s0 }
 0x111   : > { %s404_s5 = sshll.u32 %s394_s4, 4  ;;  %s405_s5 = int_to_ptr.hbm [resolvable:$true] %s404_s5 }
 0x112   : > { %s1184_s20 = sshra.s32 %s405_s5, 4  ;;  %s1185_s20 = int_to_ptr.hbm [resolvable:$true] %s1184_s20 }
 0x113   : > { %s1186_s11 = scalar_lea.hbm %s1185_s20, 1  ;;  %p1191_p10 = scmp.lt.s32.totalorder %s1185_s20, %s1887_s2 }
 0x114   : > { %p1187_p6 = scmp.ne.s32.totalorder %s1185_s20, %s1186_s11  ;;  %p1192_p11 = scmp.lt.s32.totalorder %s1484_s26, %s1186_s11 }
 0x116   : > { %p1188_p7 = pnand %p1187_p6, %p1626_p12  ;;  %p1193_p13 = por %p1192_p11, %p1191_p10 }
 0x118   : > { %p1189_p9 = pneg %p1188_p7 }
 0x11a   : > { %p1194_p1 = pnand %p1193_p13, %p1189_p9 }
 0x11c   : > { %1197 = shalt.err (!%p1194_p1)  }
 0x11d   : > { %706 = dma.hbm_to_vmem [thread:$0]  (%p1626_p12), %s405_s5, 16, %s407_s23, %s1685_s18 }
 0x11e   : > { %s412_s28 = scalar_lea.hbm %s1887_s2, %s411_s16  ;;  %s1818_s22 = sshll.u32 %s578_s13, 4  ;;  %s443_s22 = int_to_ptr.vmem [resolvable:$true] %s1818_s22 }
 0x11f   : > { %s422_s0 = sshll.u32 %s412_s28, 4  ;;  %s423_s0 = int_to_ptr.hbm [resolvable:$true] %s422_s0 }
 0x120   : > { %s1212_s30 = sshra.s32 %s423_s0, 4  ;;  %s1213_s30 = int_to_ptr.hbm [resolvable:$true] %s1212_s30 }
 0x121   : > { %s1214_s27 = scalar_lea.hbm %s1213_s30, 1  ;;  %p1219_p5 = scmp.lt.s32.totalorder %s1213_s30, %s1887_s2 }
 0x122   : > { %p1215_p2 = scmp.ne.s32.totalorder %s1213_s30, %s1214_s27  ;;  %p1220_p6 = scmp.lt.s32.totalorder %s1484_s26, %s1214_s27 }
 0x124   : > { %p1216_p3 = pnand %p1215_p2, %p1626_p12  ;;  %p1221_p7 = por %p1220_p6, %p1219_p5 }
 0x126   : > { %p1217_p0 = pneg %p1216_p3 }
 0x128   : > { %p1222_p9 = pnand %p1221_p7, %p1217_p0 }
 0x12a   : > { %1225 = shalt.err (!%p1222_p9)  }
 0x12b   : > { %709 = dma.hbm_to_vmem [thread:$0]  (%p1626_p12), %s423_s0, 16, %s425_s29, %s1685_s18 }
 0x12c   : > { %s430_s4 = scalar_lea.hbm %s1887_s2, %s1802_s24 }
 0x12d   : > { %s440_s5 = sshll.u32 %s430_s4, 4  ;;  %s441_s5 = int_to_ptr.hbm [resolvable:$true] %s440_s5 }
 0x12e   : > { %s1240_s13 = sshra.s32 %s441_s5, 4  ;;  %s1241_s13 = int_to_ptr.hbm [resolvable:$true] %s1240_s13 }
 0x12f   : > { %s1242_s20 = scalar_lea.hbm %s1241_s13, 1  ;;  %p1247_p1 = scmp.lt.s32.totalorder %s1241_s13, %s1887_s2 }
 0x130   : > { %p1243_p10 = scmp.ne.s32.totalorder %s1241_s13, %s1242_s20  ;;  %p1248_p2 = scmp.lt.s32.totalorder %s1484_s26, %s1242_s20 }
 0x132   : > { %p1244_p11 = pnand %p1243_p10, %p1626_p12  ;;  %p1249_p3 = por %p1248_p2, %p1247_p1 }
 0x134   : > { %p1245_p13 = pneg %p1244_p11 }
 0x136   : > { %p1250_p0 = pnand %p1249_p3, %p1245_p13 }
 0x138   : > { %1253 = shalt.err (!%p1250_p0)  }
 0x139   : > { %712 = dma.hbm_to_vmem [thread:$0]  (%p1626_p12), %s441_s5, 16, %s443_s22, %s1685_s18 }
 0x13a   : > { %s140_s29 = scalar_lea.vmem [#allocation9], %s1445_s9 }
 0x13b   : > { %1326 = dma.done.wait %s1477_s1, 128 }
 0x13c   : > { %1327 = vsyncadd %s1477_s1, 4294967168  ;;  %s468_s26 = scalar_lea.hbm %s1888_s3, %s1449_s10  ;;  %s470_s12 = sshll.u32 %s140_s29, 4  ;;  %v452_v0 = vld [vmem:[%s1457_s15] sm:$0xff]  ;;  %v453_v1 = vld [vmem:[#allocation6] sm:$0xff]  ;;  %s471_s12 = int_to_ptr.vmem [resolvable:$true] %s470_s12 }
 0x13d   : > { %s472_s21 = sshll.u32 %s468_s26, 4  ;;  %v454_v2 = vadd.f32 %v453_v1, %v452_v0  ;;  %s1932_s18 = sand.u32 1, %s1338_s17   ;;  %s473_s21 = int_to_ptr.hbm [resolvable:$true] %s472_s21 }
 0x13e   : > { %s457_s9 = scalar_lea.sflag [#allocation8], %s1932_s18  ;;  %s1282_s6 = sshra.s32 %s473_s21, 4  ;;  %s1283_s6 = int_to_ptr.hbm [resolvable:$true] %s1282_s6 }
 0x13f   : > { %455 = vst [vmem:[%s140_s29] sm:$0xff] %v454_v2  ;;  %s1284_s1 = scalar_lea.hbm %s1283_s6, 8  ;;  %s1288_s10 = scalar_lea.hbm %s1888_s3, 16 }
 0x140   : > { %p1285_p12 = scmp.ne.s32.totalorder %s1283_s6, %s1284_s1  ;;  %p1289_p7 = scmp.lt.s32.totalorder %s1283_s6, %s1888_s3 }
 0x141   : > { %p1290_p9 = scmp.lt.s32.totalorder %s1288_s10, %s1284_s1 }
 0x142   : > { %p1286_p5 = pnand %p1285_p12, %p1421_p4 }
 0x143   : > { %p1291_p10 = por %p1290_p9, %p1289_p7 }
 0x144   : > { %p1287_p6 = pneg %p1286_p5 }
 0x146   : > { %p1292_p11 = pnand %p1291_p10, %p1287_p6 }
 0x148   : > { %1295 = shalt.err (!%p1292_p11)
}
 0x149   : > { %713 = dma.vmem_to_hbm [thread:$0]  (%p1421_p4), %s471_s12, 128, %s473_s21, %s457_s9  }
 0x14a PF: > { %s1933_s30 = sld [smem:[#allocation67_spill]] }
 0x14b   : > { %s1934_s27 = sld [smem:[#allocation64_spill]] }
 0x150   : > { %p727_p13 = scmp.ge.s32.totalorder %s1933_s30, 2 }
 0x151   : > { %s484_s8 = sand.u32 1, %s1934_s27  }
 0x152   : > { %p720_p1 = pnand %p727_p13, %p1428_p8  ;;  %s485_s23 = scalar_lea.sflag [#allocation8], %s484_s8 }
 0x154   : > { %p721_p2 = pneg %p720_p1 }
 0x156   : > { %1329 = dma.done.wait (%p721_p2), %s485_s23, 128  }
 0x157   : > { %1331 = vsyncadd (%p721_p2), %s485_s23, 4294967168  ;;  %s25_s0 = sadd.s32 1, %s1933_s30   ;;  %s1936_s4 = sld [smem:[#allocation65_spill]] }
 0x158   : > { %p22_p3 = scmp.ge.s32.totalorder %s25_s0, 4   ;;  %s1937_s18 = sld [smem:[#allocation70_spill]] }
 0x159   : > { %s1938_s19 = sld [smem:[#allocation66_spill]]  ;;  %s1940_s16 = smov %s1338_s17 }
 0x15a   : > { %s1939_s20 = sld [smem:[#allocation68_spill]]  ;;  %24 = sbr.rel (!%p22_p3) target bundleno = 11 (0xb), region = 171 }
 0x15d   : > { %s1941_s17 = smov %s1936_s4 }
 0x15f   :  { %491 = vsyncpa [#allocation7], 1 }
 0x160   :  { %493 = vsyncpa [#allocation7 + $0x1], 1 }
 0x161   :  { %494 = vsyncpa [#allocation8], 1 }
 0x162   :  { %496 = vsyncpa [#allocation8 + $0x1], 1 }
 0x163   :  { %497 = vsyncmov [#allocation3] }
 0x166   :  { %s498_s25 = vpop.sfrf %497 }
 0x167   :  { %p655_p4 = scmp.ne.s32.totalorder %s498_s25, 0 }
 0x169   :  { %502 = shalt.err (%p655_p4)  }
 0x16a   :  { %504 = vsyncmov [#allocation3 + $0x1] }
 0x16d   :  { %s505_s5 = vpop.sfrf %504 }
 0x16e   :  { %p656_p8 = scmp.ne.s32.totalorder %s505_s5, 0 }
 0x170   :  { %509 = shalt.err (%p656_p8)  }

</bundles_post_ra>
